<compile_context>
chip_gen: v7x
topology: tpu7x:2x2x1
jax: 0.10.0
libtpu: 0.0.40
codegen_flags: <defaults>
</compile_context>

<pallas_src>
import math
import numpy as np
import jax
import jax.numpy as jnp
from jax.experimental import pallas as pl
from jax.experimental.pallas import tpu as pltpu

# MXU-native operand dtype (f32 accumulation is kept). Flip to jnp.float32 for
# bit-faithful f32 numerics at ~3x MXU cost.
_MATMUL_DTYPE = jnp.bfloat16


def _bilinear_matrix(in_size: int, out_size: int, out_pad: int) -> np.ndarray:
    """(out_pad, in_size) bilinear weight matrix matching torch interpolate with
    align_corners=False / recompute_scale_factor=True. Rows >= out_size are zero
    (they correspond to the batch-pad region and are masked to 0 in-kernel)."""
    scale = in_size / out_size
    i = np.arange(out_size, dtype=np.float64)
    src = (i + 0.5) * scale - 0.5
    src = np.maximum(src, 0.0)                      # torch clamps negative src to 0
    i0 = np.minimum(np.floor(src).astype(np.int64), in_size - 1)
    i1 = np.minimum(i0 + 1, in_size - 1)
    w1 = src - i0
    w0 = 1.0 - w1
    W = np.zeros((out_pad, in_size), dtype=np.float32)
    np.add.at(W, (np.arange(out_size), i0), w0)
    np.add.at(W, (np.arange(out_size), i1), w1)
    return W


def _choose_tile(total: int, target: int = 256, quantum: int = 32) -> int:
    """Largest multiple of `quantum` that divides `total` and is <= target."""
    best = min(total, quantum)
    t = quantum
    while t <= min(total, target):
        if total % t == 0:
            best = t
        t += quantum
    return best


def _make_kernel(h_out: int, w_out: int, th: int):
    def kernel(scale_ref, bias_ref, img_ref, wy_ref, wxt_ref, out_ref):
        c = pl.program_id(0)
        i = pl.program_id(1)
        # native-dtype input plane -> bf16 on the VPU (no host-side f32 rewrite)
        x = img_ref[0].astype(_MATMUL_DTYPE)                            # (H_in, W_in)
        t = jnp.dot(wy_ref[...], x, preferred_element_type=jnp.float32)  # (TH, W_in)
        y = jnp.dot(t.astype(_MATMUL_DTYPE), wxt_ref[...],
                    preferred_element_type=jnp.float32)                   # (TH, W_pad)
        # fold normalization into the (smaller) output; zero the batch-pad region
        rows = i * th + jax.lax.broadcasted_iota(jnp.int32, y.shape, 0)
        cols = jax.lax.broadcasted_iota(jnp.int32, y.shape, 1)
        valid = (rows < h_out) & (cols < w_out)
        y = jnp.where(valid, y * scale_ref[c] - bias_ref[c], 0.0)
        out_ref[0] = y.astype(out_ref.dtype)
    return kernel


def normalize_resize_pad(image, scale_vec, bias_vec, h_out, w_out, h_pad, w_pad,
                         out_dtype=jnp.float32):
    """Fused normalize + bilinear resize + zero-pad for one CHW image via Pallas.
    Output shape is the batch-padded (C, h_pad, w_pad); region beyond
    (h_out, w_out) is exact zeros."""
    C, H, W = image.shape
    th = _choose_tile(h_pad)
    n_h = h_pad // th

    wy = jnp.asarray(_bilinear_matrix(H, h_out, h_pad), dtype=_MATMUL_DTYPE)    # (h_pad, H)
    wxt = jnp.asarray(_bilinear_matrix(W, w_out, w_pad).T, dtype=_MATMUL_DTYPE)  # (W, w_pad)

    flops = 2 * C * (h_pad * H * W + h_pad * W * w_pad)
    bytes_accessed = int(
        image.size * image.dtype.itemsize
        + C * (wy.size + wxt.size) * 2
        + C * h_pad * w_pad * jnp.dtype(out_dtype).itemsize
    )

    out = pl.pallas_call(
        _make_kernel(h_out, w_out, th),
        out_shape=jax.ShapeDtypeStruct((C, h_pad, w_pad), out_dtype),
        grid=(C, n_h),
        in_specs=[
            pl.BlockSpec(memory_space=pltpu.MemorySpace.SMEM),      # scale = 1/std      (C,)
            pl.BlockSpec(memory_space=pltpu.MemorySpace.SMEM),      # bias  = mean/std   (C,)
            pl.BlockSpec((1, H, W), lambda c, i: (c, 0, 0)),        # image (resident over i)
            pl.BlockSpec((th, H), lambda c, i: (i, 0)),             # Wy row-tile
            pl.BlockSpec((W, w_pad), lambda c, i: (0, 0)),          # Wx^T (resident)
        ],
        out_specs=pl.BlockSpec((1, th, w_pad), lambda c, i: (c, i, 0)),
        compiler_params=pltpu.CompilerParams(
            dimension_semantics=("parallel", "parallel"),           # v7x 2-TC sharding
            vmem_limit_bytes=48 * 1024 * 1024,                      # explicit budget (v7x-safe)
        ),
        cost_estimate=pl.CostEstimate(flops=flops, transcendentals=0,
                                      bytes_accessed=bytes_accessed),
    )(scale_vec, bias_vec, image, wy, wxt)
    return out


class TransformsImgTar:
    """JAX/Pallas port of Transforms_Img_Tar.forward."""

    def __init__(self, min_size, max_size, image_mean, image_std):
        self.min_size = float(min_size)
        self.max_size = float(max_size)
        mean = jnp.asarray(image_mean, dtype=jnp.float32)
        std = jnp.asarray(image_std, dtype=jnp.float32)
        self.scale = 1.0 / std          # folded normalization: y = raw/std - mean/std
        self.bias = mean / std

    def _output_size(self, h, w):
        min_s = float(min(h, w))
        max_s = float(max(h, w))
        scale = self.min_size / min_s
        if max_s * scale > self.max_size:
            scale = self.max_size / max_s
        return int(math.floor(h * scale)), int(math.floor(w * scale))

    def forward(self, images, targets=None, size_divisible=32):
        images = list(images)
        sizes_in = [tuple(int(s) for s in im.shape[-2:]) for im in images]
        sizes_out = [self._output_size(h, w) for (h, w) in sizes_in]

        max_c = max(int(im.shape[0]) for im in images)
        stride = float(size_divisible)
        h_pad = int(math.ceil(max(h for h, _ in sizes_out) / stride) * stride)
        w_pad = int(math.ceil(max(w for _, w in sizes_out) / stride) * stride)

        outs = []
        for i, im in enumerate(images):
            h_in, w_in = sizes_in[i]
            h_out, w_out = sizes_out[i]

            y = normalize_resize_pad(im, self.scale, self.bias,
                                     h_out, w_out, h_pad, w_pad)
            if y.shape[0] < max_c:                       # rare: ragged channel count
                y = jnp.pad(y, ((0, max_c - y.shape[0]), (0, 0), (0, 0)))
            outs.append(y)

            if targets is not None and targets[i] is not None:
                target = dict(targets[i])
                ry = jnp.float32(h_out) / jnp.float32(h_in)
                rx = jnp.float32(w_out) / jnp.float32(w_in)
                b = target["boxes"]
                target["boxes"] = jnp.stack(
                    (b[:, 0] * rx, b[:, 1] * ry, b[:, 2] * rx, b[:, 3] * ry), axis=1)
                targets[i] = target

        batched = jnp.stack(outs, axis=0)                # zero-pad already done in-kernel
        list_images_size = [(h, w) for (h, w) in sizes_out]
        return batched, list_images_size, targets


if __name__ == "__main__":
    key = jax.random.PRNGKey(0)
    k1, k2, k3, k4 = jax.random.split(key, 4)

    # two differently-sized CHW images, as the DataLoader would hand over
    img0 = jax.random.uniform(k1, (3, 16, 16), dtype=jnp.float32)
    img1 = jax.random.uniform(k2, (3, 20, 12), dtype=jnp.float32)
    boxes0 = jax.random.uniform(k3, (5, 4), dtype=jnp.float32) * 16.0
    boxes1 = jax.random.uniform(k4, (4, 4), dtype=jnp.float32) * 12.0
    targets = [{"boxes": boxes0}, {"boxes": boxes1}]

    transform = TransformsImgTar(
        min_size=24,
        max_size=48,
        image_mean=[0.485, 0.456, 0.406],
        image_std=[0.229, 0.224, 0.225],
    )

    batched, list_images_size, targets_out = transform.forward([img0, img1], targets)

    jax.block_until_ready(batched)
    for t in targets_out:
        jax.block_until_ready(t["boxes"])

    # shape semantics: resized sizes (24,24) and (40,24); batch padded to stride-32
    assert batched.shape == (2, 3, 64, 32), batched.shape
    assert batched.shape[2] % 32 == 0 and batched.shape[3] % 32 == 0
    assert list_images_size == [(24, 24), (40, 24)], list_images_size

    # numeric sanity vs pure-numpy reference (explicit normalize, f32 weights)
    mean_np = np.array([0.485, 0.456, 0.406], np.float32)[:, None, None]
    std_np = np.array([0.229, 0.224, 0.225], np.float32)[:, None, None]

    def ref_resize(img_np, h_out, w_out):
        wy = _bilinear_matrix(img_np.shape[1], h_out, h_out)
        wx = _bilinear_matrix(img_np.shape[2], w_out, w_out)
        xn = (img_np - mean_np) / std_np
        return np.einsum("oh,chw,pw->cop", wy, xn, wx)

    ref0 = ref_resize(np.asarray(img0), 24, 24)
    got0 = np.asarray(batched[0, :, :24, :24])
    assert np.allclose(got0, ref0, atol=0.1, rtol=0.05), float(np.abs(got0 - ref0).max())

    # batch-pad region must be exact zeros
    assert np.all(np.asarray(batched[0, :, 24:, :]) == 0.0)
    assert np.all(np.asarray(batched[0, :, :, 24:]) == 0.0)
    assert np.all(np.asarray(batched[1, :, 40:, :]) == 0.0)
    assert np.all(np.asarray(batched[1, :, :, 24:]) == 0.0)

    print("KERNEL_OK")
</pallas_src>

<mosaic_0001>
module attributes {stable_mosaic.version = 11 : i64} {
  func.func @kernel(%arg0: i32, %arg1: i32, %arg2: memref<3xf32, #tpu.memory_space<smem>>, %arg3: memref<3xf32, #tpu.memory_space<smem>>, %arg4: memref<1x16x16xf32, #tpu.memory_space<vmem>>, %arg5: memref<64x16xbf16, #tpu.memory_space<vmem>>, %arg6: memref<16x32xbf16, #tpu.memory_space<vmem>>, %arg7: memref<1x64x32xf32, #tpu.memory_space<vmem>>) attributes {dimension_semantics = [#tpu.dimension_semantics<parallel>, #tpu.dimension_semantics<parallel>], iteration_bounds = array<i64: 3, 1>, scalar_prefetch = 0 : i64, scratch_operands = 0 : i64, tpu.core_type = #tpu.core_type<tc>, window_params = [{transform_indices = @transform_0, window_bounds = array<i64: 3>}, {transform_indices = @transform_1, window_bounds = array<i64: 3>}, {transform_indices = @transform_2, window_bounds = array<i64: 1, 16, 16>}, {transform_indices = @transform_3, window_bounds = array<i64: 64, 16>}, {pipeline_mode = #tpu.pipeline_mode<synchronous>, transform_indices = @transform_4, window_bounds = array<i64: 16, 32>}, {transform_indices = @transform_5, window_bounds = array<i64: 1, 64, 32>}]} {
    %c0 = arith.constant 0 : index
    %c0_0 = arith.constant 0 : index
    %c0_1 = arith.constant 0 : index
    %0 = vector.load %arg4[%c0, %c0_0, %c0_1] : memref<1x16x16xf32, #tpu.memory_space<vmem>>, vector<1x16x16xf32>
    %1 = vector.shape_cast %0 : vector<1x16x16xf32> to vector<16x16xf32>
    %2 = arith.truncf %1 : vector<16x16xf32> to vector<16x16xbf16>
    %c0_2 = arith.constant 0 : index
    %c0_3 = arith.constant 0 : index
    %3 = vector.load %arg5[%c0_2, %c0_3] : memref<64x16xbf16, #tpu.memory_space<vmem>>, vector<64x16xbf16>
    %cst = arith.constant dense<0.000000e+00> : vector<64x16xf32>
    %4 = tpu.matmul %3, %2, %cst {dimension_numbers = #tpu.dot_dimension_numbers<[1], [0], [0], [1], [0, 0, 1, 1], [], []>} : vector<64x16xbf16>, vector<16x16xbf16>, vector<64x16xf32> -> vector<64x16xf32>
    %5 = arith.truncf %4 : vector<64x16xf32> to vector<64x16xbf16>
    %c0_4 = arith.constant 0 : index
    %c0_5 = arith.constant 0 : index
    %6 = vector.load %arg6[%c0_4, %c0_5] : memref<16x32xbf16, #tpu.memory_space<vmem>>, vector<16x32xbf16>
    %cst_6 = arith.constant dense<0.000000e+00> : vector<64x32xf32>
    %7 = tpu.matmul %5, %6, %cst_6 {dimension_numbers = #tpu.dot_dimension_numbers<[1], [0], [0], [1], [0, 0, 1, 1], [], []>} : vector<64x16xbf16>, vector<16x32xbf16>, vector<64x32xf32> -> vector<64x32xf32>
    %c64_i32 = arith.constant 64 : i32
    %8 = arith.muli %arg1, %c64_i32 : i32
    %9 = tpu.iota {dimensions = array<i32: 0>} : vector<64x32xi32>
    %10 = vector.broadcast %8 : i32 to vector<64x32xi32>
    %11 = arith.addi %10, %9 : vector<64x32xi32>
    %12 = tpu.iota {dimensions = array<i32: 1>} : vector<64x32xi32>
    %c24_i32 = arith.constant 24 : i32
    %13 = vector.broadcast %c24_i32 : i32 to vector<64x32xi32>
    %14 = arith.cmpi slt, %11, %13 : vector<64x32xi32>
    %c24_i32_7 = arith.constant 24 : i32
    %15 = vector.broadcast %c24_i32_7 : i32 to vector<64x32xi32>
    %16 = arith.cmpi slt, %12, %15 : vector<64x32xi32>
    %17 = arith.andi %14, %16 : vector<64x32xi1>
    %18 = arith.index_cast %arg0 : i32 to index
    %19 = memref.load %arg2[%18] : memref<3xf32, #tpu.memory_space<smem>>
    %20 = vector.broadcast %19 : f32 to vector<64x32xf32>
    %21 = arith.mulf %7, %20 : vector<64x32xf32>
    %22 = arith.index_cast %arg0 : i32 to index
    %23 = memref.load %arg3[%22] : memref<3xf32, #tpu.memory_space<smem>>
    %24 = vector.broadcast %23 : f32 to vector<64x32xf32>
    %25 = arith.subf %21, %24 : vector<64x32xf32>
    %cst_8 = arith.constant 0.000000e+00 : f32
    %26 = vector.broadcast %cst_8 : f32 to vector<64x32xf32>
    %27 = arith.select %17, %25, %26 : vector<64x32xi1>, vector<64x32xf32>
    %c0_9 = arith.constant 0 : index
    %c0_10 = arith.constant 0 : index
    %c0_11 = arith.constant 0 : index
    %28 = vector.load %arg7[%c0_9, %c0_10, %c0_11] : memref<1x64x32xf32, #tpu.memory_space<vmem>>, vector<1x64x32xf32>
    %29 = vector.shape_cast %28 : vector<1x64x32xf32> to vector<64x32xf32>
    %30 = vector.shape_cast %27 : vector<64x32xf32> to vector<1x64x32xf32>
    tpu.vector_store %arg7[%c0_9, %c0_10, %c0_11], %30 {strides = array<i32>} : memref<1x64x32xf32, #tpu.memory_space<vmem>>, vector<1x64x32xf32>,
    return
  }
  func.func @transform_0(%arg0: i32, %arg1: i32) -> i32 {
    %c0_i32 = arith.constant 0 : i32
    %c0_i32_0 = arith.constant 0 : i32
    return %c0_i32 : i32
  }
  func.func @transform_1(%arg0: i32, %arg1: i32) -> i32 {
    %c0_i32 = arith.constant 0 : i32
    %c0_i32_0 = arith.constant 0 : i32
    return %c0_i32 : i32
  }
  func.func @transform_2(%arg0: i32, %arg1: i32) -> (i32, i32, i32) {
    %c0_i32 = arith.constant 0 : i32
    %c0_i32_0 = arith.constant 0 : i32
    %c0_i32_1 = arith.constant 0 : i32
    return %arg0, %c0_i32, %c0_i32_0 : i32, i32, i32
  }
  func.func @transform_3(%arg0: i32, %arg1: i32) -> (i32, i32) {
    %c0_i32 = arith.constant 0 : i32
    %c0_i32_0 = arith.constant 0 : i32
    return %arg1, %c0_i32 : i32, i32
  }
  func.func @transform_4(%arg0: i32, %arg1: i32) -> (i32, i32) {
    %c0_i32 = arith.constant 0 : i32
    %c0_i32_0 = arith.constant 0 : i32
    %c0_i32_1 = arith.constant 0 : i32
    return %c0_i32, %c0_i32_0 : i32, i32
  }
  func.func @transform_5(%arg0: i32, %arg1: i32) -> (i32, i32, i32) {
    %c0_i32 = arith.constant 0 : i32
    %c0_i32_0 = arith.constant 0 : i32
    return %arg0, %arg1, %c0_i32 : i32, i32, i32
  }
}

</mosaic_0001>

<bundles_post_ra>
// kernel: tpu_custom_call.1
= control target key start
LH: loop header
LB: loop body
LE: loop exit
PB: predicated region body
PF: predicated region fallthrough
CT: control target
= control target key end

     0   :  { %10 = vsyncpa [#allocation4], 0  ;;  %s1226_s0 = inlined_call_operand.vmem [shape: f32[3], index: 0, kind: input, shape index: {}]   ;;  %s1227_s1 = inlined_call_operand.vmem [shape: f32[3], index: 1, kind: input, shape index: {}]   ;;  %s1228_s2 = inlined_call_operand.hbm [shape: f32[3,16,16], index: 2, kind: input, shape index: {}]   ;;  %s1229_s3 = inlined_call_operand.vmem [shape: bf16[64,16], index: 3, kind: input, shape index: {}]   ;;  %s1230_s4 = inlined_call_operand.vmem [shape: bf16[16,32], index: 4, kind: input, shape index: {}]   ;;  %s1231_s5 = inlined_call_operand.vmem [shape: f32[3,64,32], index: 5, kind: output, shape index: {}]  }
   0x1   :  { %11 = vsyncpa [#allocation6], 0 }
   0x2   :  { %12 = vsyncpa [#allocation3], 0 }
   0x3   :  { %14 = vsyncpa [#allocation3 + $0x1], 0  ;;  %s1023_s18 = smov 0   ;;  %s1025_s19 = smov 0  }
   0x4   :  { %s1027_s20 = smov 0   ;;  %s1029_s21 = smov 0  }
   0x5   :  { %s1031_s22 = smov 0   ;;  %s1033_s23 = smov 0  }
   0x6 LB: > { %s720_s24 = sadd.s32 4294967295, %s985_s23   ;;  %s81_s25 = sadd.s32 1, %s973_s20  ;;  %s985_s23 = sphi %s1033_s23, %s20_s23   ;;  %s981_s22 = sphi %s1031_s22, %s1250_s22   ;;  %s977_s21 = sphi %s1029_s21, %s1249_s21   ;;  %s973_s20 = sphi %s1027_s20, %s1248_s20   ;;  %s969_s19 = sphi %s1025_s19, %s1247_s19   ;;  %s965_s18 = sphi %s1023_s18, %s1246_s18  }
   0x7   : > { %p88_p0 = scmp.ne.s32.totalorder %s973_s20, %s969_s19  ;;  %p89_p1 = scmp.eq.s32.totalorder %s985_s23, 0 }
   0x8   : > { %p94_p2 = scmp.ne.s32.totalorder %s969_s19, %s965_s18  ;;  %p1057_p3 = scmp.eq.s32.totalorder %s720_s24, 0 }
   0x9   : > { %p90_p4 = por %p89_p1, %p88_p0  ;;  %p722_p5 = scmp.ge.s32.totalorder %s985_s23, 1 }
   0xa   : > { %s1237_s26 = scalar_select %p1057_p3, 1, 0 }
   0xb   : > { %p1064_p6 = por %p1057_p3, %p94_p2  ;;  %p180_p7 = scmp.lt.s32.totalorder %s985_s23, 4 }
   0xc   : > { %s193_s30 = sshll.u32 %s1226_s0, 4  ;;  %p806_p10 = scmp.lt.s32.totalorder %s985_s23, 3  ;;  %s194_s30 = int_to_ptr.vmem [resolvable:$true] %s193_s30 }
   0xd   : > { %s1238_s27 = scalar_select %p1064_p6, 1, 0 }
   0xe   : > { %p1072_p8 = pnand %p722_p5, %p180_p7  ;;  %s204_s9 = sshll.u32 %s1227_s1, 4  ;;  %s205_s9 = int_to_ptr.vmem [resolvable:$true] %s204_s9 }
   0xf   : > { %p1088_p12 = pnand %p806_p10, %p90_p4  ;;  %s867_s12 = scalar_lea.vmem %s194_s30, 16 }
  0x10   : > { %s1239_s6 = scalar_select %p1072_p8, 1, 0 }
  0x11   : > { %p793_p9 = pneg %p1072_p8  ;;  %p868_p13 = scmp.ne.s32.totalorder %s194_s30, %s867_s12 }
  0x12   : > { %s1241_s11 = scalar_select %p1088_p12, 1, 0 }
  0x13   : > { %p1084_p11 = pnand %p793_p9, %p1057_p3  ;;  %p875_p5 = scmp.lt.s32.totalorder %s194_s30, %s194_s30 }
  0x14   : > { %p876_p7 = scmp.lt.s32.totalorder %s867_s12, %s867_s12 }
  0x15   : > { %p869_p0 = pneg %p1084_p11 }
  0x16   : > { %p877_p6 = por %p876_p7, %p875_p5 }
  0x17   : > { %p870_p1 = pnand %p869_p0, %p868_p13 }
  0x19   : > { %p871_p2 = pneg %p870_p1 }
  0x1b   : > { %p878_p8 = pnand %p877_p6, %p871_p2 }
  0x1d   : > { %881 = shalt.err (!%p878_p8)
}
  0x1e   : > { %s987_s13 = smov [#allocation2]   ;;  %s882_s14 = scalar_lea.vmem %s205_s9, 16 }
  0x1f   : > { %796 = dma.vmem_to_smem (!%p1084_p11), %s194_s30, 16, %s987_s13, [#allocation4]  }
  0x20   : > { %p883_p4 = scmp.ne.s32.totalorder %s205_s9, %s882_s14  ;;  %p890_p3 = scmp.lt.s32.totalorder %s205_s9, %s205_s9 }
  0x21   : > { %p891_p12 = scmp.lt.s32.totalorder %s882_s14, %s882_s14 }
  0x22   : > { %p885_p9 = pnand %p883_p4, %p869_p0 }
  0x23   : > { %p892_p13 = por %p891_p12, %p890_p3 }
  0x24   : > { %p886_p10 = pneg %p885_p9 }
  0x26   : > { %p893_p1 = pnand %p892_p13, %p886_p10 }
  0x28   : > { %896 = shalt.err (!%p893_p1)
}
  0x29   : > { %s988_s15 = smov [#allocation5]   ;;  %s227_s16 = sand.u32 1, %s973_s20  }
  0x2a   : > { %799 = dma.vmem_to_smem (!%p1084_p11), %s205_s9, 16, %s988_s15, [#allocation6]  }
  0x2b   : > { %s32_s17 = sadd.s32 1, %s981_s22  ;;  %s727_s18 = sshll.u32 %s227_s16, 4 }
  0x2c   : > { %p34_p6 = scmp.ge.s32.totalorder %s32_s17, 3  ;;  %s751_s24 = sshll.u32 %s981_s22, 8 }
  0x2d   : > { %s1106_s30 = scalar_lea.hbm %s1228_s2, %s751_s24  ;;  %s231_s7 = scalar_lea.vmem [#allocation7], %s727_s18 }
  0x2e   : > { %s1252_s17 = smov (%p34_p6, %s32_s17), 0  ;;  %s238_s8 = sshll.u32 %s231_s7, 4  ;;  %s1110_s8 = int_to_ptr.vmem [resolvable:$true] %s238_s8 }
  0x2f   : > { %s78_s9 = ssub.s32 %s981_s22, %s1252_s17  ;;  %s1117_s12 = scalar_lea.sflag [#allocation3], %s227_s16 }
  0x30   : > { %p79_p3 = scmp.eq.s32.totalorder %s78_s9, 0  ;;  %s897_s13 = scalar_lea.hbm %s1106_s30, 256 }
  0x31   : > { %p898_p8 = scmp.ne.s32.totalorder %s1106_s30, %s897_s13  ;;  %p1242_p11 = scmp.ne.s32.totalorder %s1241_s11, 0 }
  0x32   : > { %s1115_s10 = scalar_select %p79_p3, %s973_s20, %s81_s25  }
  0x33   : > { %p899_p12 = pneg %p1242_p11  ;;  %s902_s18 = scalar_lea.hbm %s1228_s2, 768 }
  0x34   : > { %p903_p5 = scmp.lt.u32.totalorder %s1106_s30, %s1228_s2  ;;  %p904_p7 = scmp.lt.u32.totalorder %s902_s18, %s897_s13 }
  0x35   : > { %p900_p0 = pnand %p899_p12, %p898_p8  ;;  %p906_p9 = scmp.lt.u32.totalorder %s897_s13, %s1106_s30 }
  0x36   : > { %p905_p4 = por %p904_p7, %p903_p5 }
  0x37   : > { %p901_p2 = pneg %p900_p0 }
  0x38   : > { %p907_p10 = por %p906_p9, %p905_p4 }
  0x3a   : > { %p908_p13 = pnand %p907_p10, %p901_p2 }
  0x3c   : > { %911 = shalt.err (!%p908_p13)
}
  0x3d   : > { %s912_s25 = scalar_lea.vmem %s1110_s8, 256  ;;  %s989_s16 = smov [#allocation7]  }
  0x3e   : > { %p913_p1 = scmp.ne.s32.totalorder %s1110_s8, %s912_s25  ;;  %s917_s29 = sshll.u32 %s989_s16, 4  ;;  %s918_s29 = int_to_ptr.vmem [resolvable:$false] %s917_s29 }
  0x3f   : > { %s919_s7 = scalar_lea.vmem %s918_s29, 512  ;;  %p920_p8 = scmp.lt.s32.totalorder %s1110_s8, %s918_s29 }
  0x40   : > { %p915_p6 = pnand %p913_p1, %p899_p12  ;;  %p921_p0 = scmp.lt.s32.totalorder %s919_s7, %s912_s25 }
  0x42   : > { %p916_p3 = pneg %p915_p6  ;;  %p922_p5 = por %p921_p0, %p920_p8 }
  0x44   : > { %p923_p7 = pnand %p922_p5, %p916_p3 }
  0x46   : > { %926 = shalt.err (!%p923_p7)
}
  0x47   : > { %s990_s9 = smov 128   ;;  %s991_s13 = smov 8  }
  0x48   : > { %803 = dma.hbm_to_vmem [thread:$0]  (!%p1242_p11), %s1106_s30, 256, %s1110_s8, %s1117_s12, %s990_s9, %s990_s9, %s991_s13  }
  0x49   : > { %p1243_p12 = scmp.ne.s32.totalorder %s1239_s6, 0 }
  0x4a   : > { %p1244_p2 = scmp.ne.s32.totalorder (!%p1243_p12), %s1237_s26, 0 }
  0x4b   : > { %250 = sbr.rel (%p1243_p12) target bundleno = 539 (0x21b), region = 40 }
  0x52   : > { %952 = dma.done.wait (%p1244_p2), [#allocation4], 16  }
  0x53   : > { %954 = vsyncadd (%p1244_p2), [#allocation4], 4294967280 }
  0x54   : > { %956 = dma.done.wait (%p1244_p2), [#allocation6], 16  }
  0x55   : > { %958 = vsyncadd (%p1244_p2), [#allocation6], 4294967280  ;;  %s260_s14 = sand.u32 1, %s969_s19   ;;  %p1245_p11 = scmp.ne.s32.totalorder %s1238_s27, 0 }
  0x56   : > { %s733_s11 = sshll.u32 %s260_s14, 4  ;;  %s261_s30 = scalar_lea.sflag [#allocation3], %s260_s14 }
  0x57   : > { %s264_s8 = scalar_lea.vmem [#allocation7], %s733_s11 }
  0x58   : > { %960 = dma.done.wait (%p1245_p11), %s261_s30, 256  }
  0x59   : > { %962 = vsyncadd (%p1245_p11), %s261_s30, 4294967040 }
  0x5a   : > { %269 = sfence }
  0x5b   : > { %v318_v0 = vld [vmem:[%s264_s8] sm:$0xff]  ;;  %v319_v1 = vld [vmem:[%s264_s8 + $0x8] sm:$0xff]  ;;  %vm349_vm0 = vcmask 130048   ;;  %p308_p4 = scmp.lt.s32.totalorder %s977_s21, 2  ;;  %vm582_vm1 = vcmask 261120   ;;  %v992_v20 = vmov 0.0   ;;  %v535_v21 = vlaneseq }
  0x5c   : > { %v320_v2 = vpack.c.bf16 %v319_v1, %v318_v0  ;;  %v862_v3 = vld [vmem:[%s1229_s3] sm:$0xff]   ;;  %v863_v4 = vld [vmem:[%s1229_s3 + $0x8] sm:$0xff]   ;;  %v864_v5 = vld [vmem:[%s1229_s3 + $0x10] sm:$0xff]   ;;  %s554_s11 = sld [smem:[#allocation2 + %s977_s21]] }
  0x5d   : > { %765 = vmatprep.mubr.msk.bf16.mxu0 %vm349_vm0, %v862_v3  ;;  %v865_v6 = vld [vmem:[%s1229_s3 + $0x18] sm:$0xff]   ;;  %v866_v7 = vld [vmem:[%s1230_s4] sm:$0xff]   ;;  %s309_s29 = scalar_select %p308_p4, %s977_s21, 2  ;;  %v536_v22 = vand.u32 127, %v535_v21 }
  0x5e   : > { %763 = vmatprep.subr.bf16.mxu0 %v320_v2  ;;  %773 = vmatprep.subr.bf16.mxu1 %v866_v7  ;;  %s564_s30 = sld [smem:[#allocation5 + %s977_s21]] }
  0x5f   : > { %764 = vmatpush3.bf16.msra.mxu0 %v320_v2  ;;  %774 = vmatpush3.bf16.msra.mxu1 %v866_v7  ;;  %s752_s7 = sshll.u32 %s309_s29, 6  ;;  %vm545_vm2 = vcmp.lt.s32.totalorder %v536_v22, 24 }
  0x60   : > { %s1188_s14 = scalar_lea.vmem %s1231_s5, %s752_s7 }
  0x61   : > { %586 = vst.msk [vmem:[%s1188_s14 + $0x18] sm:$0xff] %vm582_vm1, %v992_v20  ;;  %587 = vst.msk [vmem:[%s1188_s14 + $0x20] sm:$0xff] %vm582_vm1, %v992_v20 }
  0x62   : > { %766 = vmatmul.mubr.msk.bf16.vlgmr.msra.gmra.mrb[0].mxu0 %vm349_vm0, %v863_v4  ;;  %588 = vst.msk [vmem:[%s1188_s14 + $0x28] sm:$0xff] %vm582_vm1, %v992_v20  ;;  %589 = vst.msk [vmem:[%s1188_s14 + $0x30] sm:$0xff] %vm582_vm1, %v992_v20  ;;  %v555_v23 = vstv %s554_s11 }
  0x63   : > { %769 = vmatprep.mubr.msk.bf16.mxu0 %vm349_vm0, %v864_v5  ;;  %590 = vst.msk [vmem:[%s1188_s14 + $0x38] sm:$0xff] %vm582_vm1, %v992_v20 }
  0x64   : > { %v565_v25 = vstv %s564_s30 }
  0x6a   : > { %770 = vmatmul.mubr.msk.bf16.gmra.mrb[4].mxu0 %vm349_vm0, %v865_v6 }
 0x135   : > { %v767_v8 = vpop.f32.mrb[0].mxu0 }
 0x136   : > { %v396_v9 = vpop.f32.mrb[1].mxu0 }
 0x137   : > { %v768_v10 = vpop.f32.mrb[2].mxu0 }
 0x138   : > { %v428_v11 = vpack.c.bf16 %v768_v10, %v767_v8  ;;  %v399_v12 = vpop.f32.mrb[3].mxu0 }
 0x139   : > { %v427_v13 = vpack.c.bf16 %v399_v12, %v396_v9 }
 0x13b   : > { %775 = vmatprep.mubr.msk.bf16.mxu1 %vm349_vm0, %v427_v13 }
 0x13c   : > { %776 = vmatmul.mubr.msk.bf16.vlgmr.msra.gmra.mrb[0].mxu1 %vm349_vm0, %v428_v11 }
 0x13d   : > { %v771_v14 = vpop.f32.mrb[4].mxu0 }
 0x13e   : > { %v412_v15 = vpop.f32.mrb[5].mxu0 }
 0x13f   : > { %v772_v16 = vpop.f32.mrb[6].mxu0 }
 0x140   : > { %v430_v17 = vpack.c.bf16 %v772_v16, %v771_v14  ;;  %v415_v18 = vpop.f32.mrb[7].mxu0 }
 0x141   : > { %v429_v19 = vpack.c.bf16 %v415_v18, %v412_v15 }
 0x143   : > { %779 = vmatprep.mubr.msk.bf16.mxu1 %vm349_vm0, %v429_v19 }
 0x144   : > { %780 = vmatmul.mubr.msk.bf16.gmra.mrb[4].mxu1 %vm349_vm0, %v430_v17 }
 0x20f   : > { %v777_v24 = vpop.f32.mrb[0].mxu1 }
 0x210   : > { %v558_v26 = vmul.f32 %v777_v24, %v555_v23  ;;  %v485_v27 = vpop.f32.mrb[1].mxu1 }
 0x211   : > { %v556_v28 = vmul.f32 %v555_v23, %v485_v27  ;;  %v778_v29 = vpop.f32.mrb[2].mxu1 }
 0x212   : > { %v568_v30 = vsub.f32 %v558_v26, %v565_v25  ;;  %v488_v31 = vpop.f32.mrb[3].mxu1 }
 0x213   : > { %v566_v32 = vsub.f32 %v556_v28, %v565_v25  ;;  %v557_v33 = vmul.f32 %v555_v23, %v488_v31 }
 0x214   : > { %v576_v34 = vsel %vm545_vm2, %v568_v30, 0.0 }
 0x215   : > { %585 = vst.msk [vmem:[%s1188_s14 + $0x10] sm:$0xff] %vm582_vm1, %v576_v34  ;;  %v574_v35 = vsel %vm545_vm2, %v566_v32, 0.0  ;;  %v567_v36 = vsub.f32 %v557_v33, %v565_v25 }
 0x216   : > { %583 = vst.msk [vmem:[%s1188_s14] sm:$0xff] %vm582_vm1, %v574_v35 }
 0x217   : > { %v575_v37 = vsel %vm545_vm2, %v567_v36, 0.0  ;;  %v781_v38 = vpop.f32.mrb[4].mxu1 }
 0x218   : > { %584 = vst.msk [vmem:[%s1188_s14 + $0x8] sm:$0xff] %vm582_vm1, %v575_v37  ;;  %v501_v39 = vpop.f32.mrb[5].mxu1 }
 0x219   : > { %v782_v40 = vpop.f32.mrb[6].mxu1 }
 0x21a   : > { %v504_v41 = vpop.f32.mrb[7].mxu1 }
 0x21b PF: > { %s20_s23 = sadd.s32 1, %s985_s23   ;;  %s1246_s18 = smov %s969_s19 }
 0x21c   : > { %p17_p9 = scmp.ge.s32.totalorder %s20_s23, 5   ;;  %s1247_s19 = smov %s973_s20 }
 0x21d   : > { %s1248_s20 = smov %s1115_s10  ;;  %s1249_s21 = smov %s981_s22 }
 0x21e   : > { %s1250_s22 = smov %s1252_s17  ;;  %19 = sbr.rel (!%p17_p9) target bundleno = 6 (0x6), region = 92 }
 0x225   :  { %621 = vsyncpa [#allocation3], 1 }
 0x226   :  { %623 = vsyncpa [#allocation3 + $0x1], 1 }
 0x227   :  { %624 = vsyncpa [#allocation4], 1 }
 0x228   :  { %626 = vsyncpa [#allocation4 + $0x1], 1 }
 0x229   :  { %627 = vsyncpa [#allocation6], 1 }

</bundles_post_ra>
